<compile_context>
chip_gen: v6e
topology: v6e:2x2x1
jax: 0.10.0
libtpu: 0.0.40
codegen_flags: <defaults>
</compile_context>

<pallas_src>
import functools

import numpy as np
import jax
import jax.numpy as jnp
from jax.experimental import pallas as pl
from jax.experimental.pallas import tpu as pltpu

N, C, H, W = 2, 4, 16, 16
EPS = 1e-5          # nn.BatchNorm2d default
CP = 8              # sublane-padded channel count (every tap block = 8 rows)
VEC_OFF = 128       # lane offset of the per-channel vector block in the slab
NEG_FLOOR = -1e30   # "no ReLU" floor for the identity rows


def _recon_kernel(x_ref, p_ref, out_ref, *, w, nhw, cp):
    inv_n = 1.0 / float(nhw)

    x = x_ref[...]                                   # (cp, nhw) channel-major

    # ---- unpack parameter slab (static, lane/sublane-aligned slices) ------
    w1f = p_ref[0:cp, 0:9 * cp]                      # fused conv_1 + conv_3
    w3f = p_ref[cp:2 * cp, 0:9 * cp]                 # second conv_3
    vec = p_ref[0:cp, VEC_OFF:VEC_OFF + 8]           # (cp, 8) per-channel vecs
    b1f, g_a, c_a, b_a, floor1, b3f, g_b, b_b = [
        vec[:, i:i + 1] for i in range(8)]

    # ---- border masks (destination-indexed), broadcast & combined ONCE ----
    def mask_row(i):
        return jnp.broadcast_to(p_ref[2 * cp + i:2 * cp + i + 1, :], (cp, nhw))

    m_dy = {0: mask_row(0), 2: mask_row(1)}
    m_dx = {0: mask_row(2), 2: mask_row(3)}
    tap_mask = {}
    for dy in range(3):
        for dx in range(3):
            my, mx = m_dy.get(dy), m_dx.get(dx)
            if my is None:
                tap_mask[(dy, dx)] = mx              # edge or center tap
            elif mx is None:
                tap_mask[(dy, dx)] = my
            else:
                tap_mask[(dy, dx)] = my * mx         # corner: product, hoisted

    def build_patch(v):
        # (cp, nhw) -> (9*cp, nhw) im2col patch.  Shifts on the XLU via roll;
        # circular wrap (incl. across batch images) is zeroed by the masks.
        blocks = []
        for dy in range(3):
            for dx in range(3):
                delta = (dy - 1) * w + (dx - 1)
                s = v if delta == 0 else pltpu.roll(v, (-delta) % nhw, axis=1)
                m = tap_mask[(dy, dx)]
                if m is not None:
                    s = s * m
                blocks.append(s)
        return jnp.concatenate(blocks, axis=0)       # 8-row aligned concat

    def row_stats(v):
        # train-mode BatchNorm2d stats: per row == per channel over (N,H,W);
        # two-pass (mean, then centred variance) in f32.
        mean = jnp.sum(v, axis=1, keepdims=True) * inv_n
        d = v - mean
        var = jnp.sum(d * d, axis=1, keepdims=True) * inv_n
        return mean, jax.lax.rsqrt(var + EPS)

    # ---- stage 1: conv_1 (identity) + conv_3 fused into ONE matmul --------
    # out1 rows 0:c = identity, rows c:2c = t = conv_3(x).
    out1 = jnp.dot(w1f, build_patch(x),
                   preferred_element_type=jnp.float32) + b1f
    # BN+ReLU on the t rows only, identity passthrough, via per-row vectors:
    #   rows 0:c : scale 1, shift 0, floor -inf -> identity unchanged
    #   rows c:2c: gamma*rsqrt, beta-...,  floor 0 -> relu(bn(t))
    mean1, rs1 = row_stats(out1)
    s1 = g_a * rs1
    a1 = jnp.maximum(out1 * (s1 + c_a) + (b_a - s1 * mean1), floor1)

    # ---- stage 2: second conv_3 (one matmul), residual, BN, ReLU ----------
    # w3f only reads the relu(bn(t)) rows of the patch (identity cols are 0).
    out2 = jnp.dot(w3f, build_patch(a1),
                   preferred_element_type=jnp.float32) + b3f
    s = a1 + out2                        # rows 0:c = identity + conv_3(...)
    mean2, rs2 = row_stats(s)
    s2 = g_b * rs2                       # pad rows: gamma=0 -> forced to 0
    out_ref[...] = jnp.maximum(s * s2 + (b_b - s2 * mean2), 0.0)
    # TODO(synk): BatchNorm running_mean/running_var updates are a
    # training-only side effect with no functional output; not reproduced.


def pack_recon_params(w3, b3, w1, b1, gamma, beta, n, c, h, w):
    """Build the packed parameter slab ONCE at init time (numpy, host side)."""
    hw, nhw = h * w, n * h * w
    assert 2 * c <= CP and 9 * CP <= nhw and VEC_OFF + 8 <= nhw
    w3 = np.asarray(w3, np.float32)
    w1 = np.asarray(w1, np.float32)
    b3 = np.asarray(b3, np.float32)
    b1 = np.asarray(b1, np.float32)
    gamma = np.asarray(gamma, np.float32)
    beta = np.asarray(beta, np.float32)

    # Weights, tap-major (k = dy*3 + dx), 8 columns per tap (c real + pad 0).
    w1f = np.zeros((CP, 9 * CP), np.float32)
    w3f = np.zeros((CP, 9 * CP), np.float32)
    for dy in range(3):
        for dx in range(3):
            k = dy * 3 + dx
            w1f[c:2 * c, k * CP:k * CP + c] = w3[:, :, dy, dx]
            w3f[0:c, k * CP + c:k * CP + 2 * c] = w3[:, :, dy, dx]
    w1f[0:c, 4 * CP:4 * CP + c] = w1[:, :, 0, 0]       # conv_1 = center tap

    # Per-channel (CP,) vectors packed as columns of a (CP, 8) block.
    vec = np.zeros((CP, 8), np.float32)
    vec[0:c, 0] = b1
    vec[c:2 * c, 0] = b3           # stage-1 bias  [b1 ; b3]
    vec[c:2 * c, 1] = gamma        # BN-1 gamma (t rows only)
    vec[0:c, 2] = 1.0              # identity passthrough scale
    vec[c:2 * c, 3] = beta         # BN-1 beta
    vec[0:c, 4] = NEG_FLOOR        # no ReLU on identity rows
    vec[0:c, 5] = b3               # stage-2 bias
    vec[0:c, 6] = gamma            # BN-2 gamma (pad rows stay 0 -> zeroed)
    vec[0:c, 7] = beta             # BN-2 beta

    # 0/1 border masks over the flat (N*H*W) lane axis (destination-indexed).
    q = np.arange(nhw)
    xcol, yrow = q % w, (q % hw) // w
    masks = np.stack([yrow > 0, yrow < h - 1,
                      xcol > 0, xcol < w - 1]).astype(np.float32)

    slab = np.zeros((3 * CP, nhw), np.float32)
    slab[0:CP, 0:9 * CP] = w1f
    slab[0:CP, VEC_OFF:VEC_OFF + 8] = vec
    slab[CP:2 * CP, 0:9 * CP] = w3f
    slab[2 * CP:2 * CP + 4, :] = masks
    return jnp.asarray(slab)


@jax.jit
def recon_net_forward(x_nchw, params):
    """x_nchw: (N, C, H, W) f32; params: slab from pack_recon_params."""
    n, c, h, w = x_nchw.shape
    nhw = n * h * w
    # channel-major, lane-dense layout (tiny transpose/reshape, under jit).
    x_c = jnp.transpose(x_nchw, (1, 0, 2, 3)).reshape(c, nhw).astype(jnp.float32)
    x_pad = x_c if c == CP else jnp.concatenate(
        [x_c, jnp.zeros((CP - c, nhw), jnp.float32)], axis=0)

    kernel = functools.partial(_recon_kernel, w=w, nhw=nhw, cp=CP)
    vmem = pl.BlockSpec(memory_space=pltpu.MemorySpace.VMEM)
    out = pl.pallas_call(
        kernel,
        out_shape=jax.ShapeDtypeStruct((CP, nhw), jnp.float32),
        in_specs=[vmem, vmem],
        out_specs=vmem,
    )(x_pad, params)
    return jnp.transpose(out[0:c].reshape(c, n, h, w), (1, 0, 2, 3))


def reference_forward(x, w3, b3, w1, b1, gamma, beta):
    """Pure-JAX NCHW reference (mirrors the PyTorch module, train-mode BN)."""
    def conv(v, wgt, b, pad):
        y = jax.lax.conv_general_dilated(
            v, wgt, window_strides=(1, 1), padding=[(pad, pad), (pad, pad)],
            dimension_numbers=('NCHW', 'OIHW', 'NCHW'))
        return y + b.reshape(1, -1, 1, 1)

    def bn(v):
        mean = v.mean(axis=(0, 2, 3), keepdims=True)
        var = ((v - mean) ** 2).mean(axis=(0, 2, 3), keepdims=True)
        return (gamma.reshape(1, -1, 1, 1) * (v - mean)
                * jax.lax.rsqrt(var + EPS) + beta.reshape(1, -1, 1, 1))

    identity = conv(x, w1, b1, 0)
    t = jax.nn.relu(bn(conv(x, w3, b3, 1)))
    t = conv(t, w3, b3, 1)
    return jax.nn.relu(bn(identity + t))


if __name__ == "__main__":
    key = jax.random.PRNGKey(0)
    kx, k1, k2, k3, k4, k5, k6 = jax.random.split(key, 7)

    x = jax.random.normal(kx, (N, C, H, W), jnp.float32)
    # deterministic synthetic parameters (shapes from recon_net.__init__)
    w3 = jax.random.normal(k1, (C, C, 3, 3), jnp.float32) * 0.2
    b3 = jax.random.normal(k2, (C,), jnp.float32) * 0.1
    w1 = jax.random.normal(k3, (C, C, 1, 1), jnp.float32) * 0.2
    b1 = jax.random.normal(k4, (C,), jnp.float32) * 0.1
    gamma = 1.0 + 0.1 * jax.random.normal(k5, (C,), jnp.float32)
    beta = 0.1 * jax.random.normal(k6, (C,), jnp.float32)

    # init-time, once: packed parameter slab
    params = pack_recon_params(w3, b3, w1, b1, gamma, beta, N, C, H, W)

    out = jax.block_until_ready(recon_net_forward(x, params))
    ref = jax.block_until_ready(
        reference_forward(x, w3, b3, w1, b1, gamma, beta))

    assert out.shape == (N, C, H, W)
    err = float(jnp.max(jnp.abs(out - ref)))
    assert jnp.allclose(out, ref, atol=1e-4, rtol=1e-4), err

    print("KERNEL_OK")
</pallas_src>

<mosaic_0001>
module attributes {stable_mosaic.version = 11 : i64} {
  func.func @_recon_kernel(%arg0: memref<8x512xf32, #tpu.memory_space<vmem>>, %arg1: memref<24x512xf32, #tpu.memory_space<vmem>>, %arg2: memref<8x512xf32, #tpu.memory_space<vmem>>) attributes {dimension_semantics = [], scalar_prefetch = 0 : i64, scratch_operands = 0 : i64, tpu.core_type = #tpu.core_type<tc>} {
    %c0 = arith.constant 0 : index
    %c0_0 = arith.constant 0 : index
    %0 = vector.load %arg0[%c0, %c0_0] : memref<8x512xf32, #tpu.memory_space<vmem>>, vector<8x512xf32>
    %c0_1 = arith.constant 0 : index
    %c0_2 = arith.constant 0 : index
    %1 = vector.load %arg1[%c0_1, %c0_2] : memref<24x512xf32, #tpu.memory_space<vmem>>, vector<8x72xf32>
    %c8 = arith.constant 8 : index
    %c0_3 = arith.constant 0 : index
    %2 = vector.load %arg1[%c8, %c0_3] : memref<24x512xf32, #tpu.memory_space<vmem>>, vector<8x72xf32>
    %c0_4 = arith.constant 0 : index
    %c128 = arith.constant 128 : index
    %3 = vector.load %arg1[%c0_4, %c128] : memref<24x512xf32, #tpu.memory_space<vmem>>, vector<8x8xf32>
    %4 = vector.extract_strided_slice %3 {offsets = [0, 0], sizes = [8, 1], strides = [1, 1]} : vector<8x8xf32> to vector<8x1xf32>
    %5 = vector.extract_strided_slice %3 {offsets = [0, 1], sizes = [8, 1], strides = [1, 1]} : vector<8x8xf32> to vector<8x1xf32>
    %6 = vector.extract_strided_slice %3 {offsets = [0, 2], sizes = [8, 1], strides = [1, 1]} : vector<8x8xf32> to vector<8x1xf32>
    %7 = vector.extract_strided_slice %3 {offsets = [0, 3], sizes = [8, 1], strides = [1, 1]} : vector<8x8xf32> to vector<8x1xf32>
    %8 = vector.extract_strided_slice %3 {offsets = [0, 4], sizes = [8, 1], strides = [1, 1]} : vector<8x8xf32> to vector<8x1xf32>
    %9 = vector.extract_strided_slice %3 {offsets = [0, 5], sizes = [8, 1], strides = [1, 1]} : vector<8x8xf32> to vector<8x1xf32>
    %10 = vector.extract_strided_slice %3 {offsets = [0, 6], sizes = [8, 1], strides = [1, 1]} : vector<8x8xf32> to vector<8x1xf32>
    %11 = vector.extract_strided_slice %3 {offsets = [0, 7], sizes = [8, 1], strides = [1, 1]} : vector<8x8xf32> to vector<8x1xf32>
    %c16 = arith.constant 16 : index
    %c0_5 = arith.constant 0 : index
    %12 = vector.load %arg1[%c16, %c0_5] : memref<24x512xf32, #tpu.memory_space<vmem>>, vector<1x512xf32>
    %13 = vector.shape_cast %12 : vector<1x512xf32> to vector<1x512xf32>
    %14 = vector.broadcast %13 : vector<1x512xf32> to vector<8x512xf32>
    %c17 = arith.constant 17 : index
    %c0_6 = arith.constant 0 : index
    %15 = vector.load %arg1[%c17, %c0_6] : memref<24x512xf32, #tpu.memory_space<vmem>>, vector<1x512xf32>
    %16 = vector.shape_cast %15 : vector<1x512xf32> to vector<1x512xf32>
    %17 = vector.broadcast %16 : vector<1x512xf32> to vector<8x512xf32>
    %c18 = arith.constant 18 : index
    %c0_7 = arith.constant 0 : index
    %18 = vector.load %arg1[%c18, %c0_7] : memref<24x512xf32, #tpu.memory_space<vmem>>, vector<1x512xf32>
    %19 = vector.shape_cast %18 : vector<1x512xf32> to vector<1x512xf32>
    %20 = vector.broadcast %19 : vector<1x512xf32> to vector<8x512xf32>
    %c19 = arith.constant 19 : index
    %c0_8 = arith.constant 0 : index
    %21 = vector.load %arg1[%c19, %c0_8] : memref<24x512xf32, #tpu.memory_space<vmem>>, vector<1x512xf32>
    %22 = vector.shape_cast %21 : vector<1x512xf32> to vector<1x512xf32>
    %23 = vector.broadcast %22 : vector<1x512xf32> to vector<8x512xf32>
    %24 = arith.mulf %14, %20 : vector<8x512xf32>
    %25 = arith.mulf %14, %23 : vector<8x512xf32>
    %26 = arith.mulf %17, %20 : vector<8x512xf32>
    %27 = arith.mulf %17, %23 : vector<8x512xf32>
    %c17_i32 = arith.constant 17 : i32
    %28 = tpu.dynamic_rotate %0 by %c17_i32 dim 1 : vector<8x512xf32>, i32 -> vector<8x512xf32>
    %29 = arith.mulf %28, %24 : vector<8x512xf32>
    %c16_i32 = arith.constant 16 : i32
    %30 = tpu.dynamic_rotate %0 by %c16_i32 dim 1 : vector<8x512xf32>, i32 -> vector<8x512xf32>
    %31 = arith.mulf %30, %14 : vector<8x512xf32>
    %c15_i32 = arith.constant 15 : i32
    %32 = tpu.dynamic_rotate %0 by %c15_i32 dim 1 : vector<8x512xf32>, i32 -> vector<8x512xf32>
    %33 = arith.mulf %32, %25 : vector<8x512xf32>
    %c1_i32 = arith.constant 1 : i32
    %34 = tpu.dynamic_rotate %0 by %c1_i32 dim 1 : vector<8x512xf32>, i32 -> vector<8x512xf32>
    %35 = arith.mulf %34, %20 : vector<8x512xf32>
    %c511_i32 = arith.constant 511 : i32
    %36 = tpu.dynamic_rotate %0 by %c511_i32 dim 1 : vector<8x512xf32>, i32 -> vector<8x512xf32>
    %37 = arith.mulf %36, %23 : vector<8x512xf32>
    %c497_i32 = arith.constant 497 : i32
    %38 = tpu.dynamic_rotate %0 by %c497_i32 dim 1 : vector<8x512xf32>, i32 -> vector<8x512xf32>
    %39 = arith.mulf %38, %26 : vector<8x512xf32>
    %c496_i32 = arith.constant 496 : i32
    %40 = tpu.dynamic_rotate %0 by %c496_i32 dim 1 : vector<8x512xf32>, i32 -> vector<8x512xf32>
    %41 = arith.mulf %40, %17 : vector<8x512xf32>
    %c495_i32 = arith.constant 495 : i32
    %42 = tpu.dynamic_rotate %0 by %c495_i32 dim 1 : vector<8x512xf32>, i32 -> vector<8x512xf32>
    %43 = arith.mulf %42, %27 : vector<8x512xf32>
    %44 = tpu.concatenate %29, %31, %33, %35, %0, %37, %39, %41, %43 in 0 : vector<8x512xf32>, vector<8x512xf32>, vector<8x512xf32>, vector<8x512xf32>, vector<8x512xf32>, vector<8x512xf32>, vector<8x512xf32>, vector<8x512xf32>, vector<8x512xf32> -> vector<72x512xf32>
    %cst = arith.constant dense<0.000000e+00> : vector<8x512xf32>
    %45 = tpu.matmul %1, %44, %cst {dimension_numbers = #tpu.dot_dimension_numbers<[1], [0], [0], [1], [0, 0, 1, 1], [], []>} : vector<8x72xf32>, vector<72x512xf32>, vector<8x512xf32> -> vector<8x512xf32>
    %46 = vector.broadcast %4 : vector<8x1xf32> to vector<8x512xf32>
    %47 = arith.addf %45, %46 : vector<8x512xf32>
    %cst_9 = arith.constant dense<0.000000e+00> : vector<8xf32>
    %48 = vector.multi_reduction <add>, %47, %cst_9 [1] : vector<8x512xf32> to vector<8xf32>
    %49 = vector.shape_cast %48 : vector<8xf32> to vector<8x1xf32>
    %cst_10 = arith.constant 0.001953125 : f32
    %50 = vector.broadcast %cst_10 : f32 to vector<8x1xf32>
    %51 = arith.mulf %49, %50 : vector<8x1xf32>
    %52 = vector.broadcast %51 : vector<8x1xf32> to vector<8x512xf32>
    %53 = arith.subf %47, %52 : vector<8x512xf32>
    %54 = arith.mulf %53, %53 : vector<8x512xf32>
    %cst_11 = arith.constant dense<0.000000e+00> : vector<8xf32>
    %55 = vector.multi_reduction <add>, %54, %cst_11 [1] : vector<8x512xf32> to vector<8xf32>
    %56 = vector.shape_cast %55 : vector<8xf32> to vector<8x1xf32>
    %cst_12 = arith.constant 0.001953125 : f32
    %57 = vector.broadcast %cst_12 : f32 to vector<8x1xf32>
    %58 = arith.mulf %56, %57 : vector<8x1xf32>
    %cst_13 = arith.constant 9.99999974E-6 : f32
    %59 = vector.broadcast %cst_13 : f32 to vector<8x1xf32>
    %60 = arith.addf %58, %59 : vector<8x1xf32>
    %61 = math.rsqrt %60 : vector<8x1xf32>
    %62 = arith.mulf %5, %61 : vector<8x1xf32>
    %63 = arith.addf %62, %6 : vector<8x1xf32>
    %64 = vector.broadcast %63 : vector<8x1xf32> to vector<8x512xf32>
    %65 = arith.mulf %47, %64 : vector<8x512xf32>
    %66 = arith.mulf %62, %51 : vector<8x1xf32>
    %67 = arith.subf %7, %66 : vector<8x1xf32>
    %68 = vector.broadcast %67 : vector<8x1xf32> to vector<8x512xf32>
    %69 = arith.addf %65, %68 : vector<8x512xf32>
    %70 = vector.broadcast %8 : vector<8x1xf32> to vector<8x512xf32>
    %71 = arith.maximumf %69, %70 : vector<8x512xf32>
    %c17_i32_14 = arith.constant 17 : i32
    %72 = tpu.dynamic_rotate %71 by %c17_i32_14 dim 1 : vector<8x512xf32>, i32 -> vector<8x512xf32>
    %73 = arith.mulf %72, %24 : vector<8x512xf32>
    %c16_i32_15 = arith.constant 16 : i32
    %74 = tpu.dynamic_rotate %71 by %c16_i32_15 dim 1 : vector<8x512xf32>, i32 -> vector<8x512xf32>
    %75 = arith.mulf %74, %14 : vector<8x512xf32>
    %c15_i32_16 = arith.constant 15 : i32
    %76 = tpu.dynamic_rotate %71 by %c15_i32_16 dim 1 : vector<8x512xf32>, i32 -> vector<8x512xf32>
    %77 = arith.mulf %76, %25 : vector<8x512xf32>
    %c1_i32_17 = arith.constant 1 : i32
    %78 = tpu.dynamic_rotate %71 by %c1_i32_17 dim 1 : vector<8x512xf32>, i32 -> vector<8x512xf32>
    %79 = arith.mulf %78, %20 : vector<8x512xf32>
    %c511_i32_18 = arith.constant 511 : i32
    %80 = tpu.dynamic_rotate %71 by %c511_i32_18 dim 1 : vector<8x512xf32>, i32 -> vector<8x512xf32>
    %81 = arith.mulf %80, %23 : vector<8x512xf32>
    %c497_i32_19 = arith.constant 497 : i32
    %82 = tpu.dynamic_rotate %71 by %c497_i32_19 dim 1 : vector<8x512xf32>, i32 -> vector<8x512xf32>
    %83 = arith.mulf %82, %26 : vector<8x512xf32>
    %c496_i32_20 = arith.constant 496 : i32
    %84 = tpu.dynamic_rotate %71 by %c496_i32_20 dim 1 : vector<8x512xf32>, i32 -> vector<8x512xf32>
    %85 = arith.mulf %84, %17 : vector<8x512xf32>
    %c495_i32_21 = arith.constant 495 : i32
    %86 = tpu.dynamic_rotate %71 by %c495_i32_21 dim 1 : vector<8x512xf32>, i32 -> vector<8x512xf32>
    %87 = arith.mulf %86, %27 : vector<8x512xf32>
    %88 = tpu.concatenate %73, %75, %77, %79, %71, %81, %83, %85, %87 in 0 : vector<8x512xf32>, vector<8x512xf32>, vector<8x512xf32>, vector<8x512xf32>, vector<8x512xf32>, vector<8x512xf32>, vector<8x512xf32>, vector<8x512xf32>, vector<8x512xf32> -> vector<72x512xf32>
    %cst_22 = arith.constant dense<0.000000e+00> : vector<8x512xf32>
    %89 = tpu.matmul %2, %88, %cst_22 {dimension_numbers = #tpu.dot_dimension_numbers<[1], [0], [0], [1], [0, 0, 1, 1], [], []>} : vector<8x72xf32>, vector<72x512xf32>, vector<8x512xf32> -> vector<8x512xf32>
    %90 = vector.broadcast %9 : vector<8x1xf32> to vector<8x512xf32>
    %91 = arith.addf %89, %90 : vector<8x512xf32>
    %92 = arith.addf %71, %91 : vector<8x512xf32>
    %cst_23 = arith.constant dense<0.000000e+00> : vector<8xf32>
    %93 = vector.multi_reduction <add>, %92, %cst_23 [1] : vector<8x512xf32> to vector<8xf32>
    %94 = vector.shape_cast %93 : vector<8xf32> to vector<8x1xf32>
    %cst_24 = arith.constant 0.001953125 : f32
    %95 = vector.broadcast %cst_24 : f32 to vector<8x1xf32>
    %96 = arith.mulf %94, %95 : vector<8x1xf32>
    %97 = vector.broadcast %96 : vector<8x1xf32> to vector<8x512xf32>
    %98 = arith.subf %92, %97 : vector<8x512xf32>
    %99 = arith.mulf %98, %98 : vector<8x512xf32>
    %cst_25 = arith.constant dense<0.000000e+00> : vector<8xf32>
    %100 = vector.multi_reduction <add>, %99, %cst_25 [1] : vector<8x512xf32> to vector<8xf32>
    %101 = vector.shape_cast %100 : vector<8xf32> to vector<8x1xf32>
    %cst_26 = arith.constant 0.001953125 : f32
    %102 = vector.broadcast %cst_26 : f32 to vector<8x1xf32>
    %103 = arith.mulf %101, %102 : vector<8x1xf32>
    %cst_27 = arith.constant 9.99999974E-6 : f32
    %104 = vector.broadcast %cst_27 : f32 to vector<8x1xf32>
    %105 = arith.addf %103, %104 : vector<8x1xf32>
    %106 = math.rsqrt %105 : vector<8x1xf32>
    %107 = arith.mulf %10, %106 : vector<8x1xf32>
    %108 = vector.broadcast %107 : vector<8x1xf32> to vector<8x512xf32>
    %109 = arith.mulf %92, %108 : vector<8x512xf32>
    %110 = arith.mulf %107, %96 : vector<8x1xf32>
    %111 = arith.subf %11, %110 : vector<8x1xf32>
    %112 = vector.broadcast %111 : vector<8x1xf32> to vector<8x512xf32>
    %113 = arith.addf %109, %112 : vector<8x512xf32>
    %cst_28 = arith.constant 0.000000e+00 : f32
    %114 = vector.broadcast %cst_28 : f32 to vector<8x512xf32>
    %115 = arith.maximumf %113, %114 : vector<8x512xf32>
    %c0_29 = arith.constant 0 : index
    %c0_30 = arith.constant 0 : index
    %116 = vector.load %arg2[%c0_29, %c0_30] : memref<8x512xf32, #tpu.memory_space<vmem>>, vector<8x512xf32>
    tpu.vector_store %arg2[%c0_29, %c0_30], %115 {strides = array<i32>} : memref<8x512xf32, #tpu.memory_space<vmem>>, vector<8x512xf32>,
    return
  }
}

</mosaic_0001>

<bundles_post_ra>
// kernel: recon_net_forward.1
= control target key start
LH: loop header
LB: loop body
LE: loop exit
PB: predicated region body
PF: predicated region fallthrough
CT: control target
= control target key end

     0   :  { %s851_s13 = smov 111   ;;  %s852_s16 = smov 112   ;;  %v858_v4 = vmov 0.0   ;;  %v860_v5 = vmov 0   ;;  %v21_v7 = vlaneseq  ;;  %vm269_vm8 = vcmask 588800   ;;  %s1426_s0 = inlined_call_operand.vmem [shape: f32[8,512], index: 0, kind: input, shape index: {}]   ;;  %s1427_s1 = inlined_call_operand.vmem [shape: f32[24,512], index: 1, kind: input, shape index: {}]   ;;  %s1428_s2 = inlined_call_operand.vmem [shape: f32[8,512], index: 2, kind: output, shape index: {}]  }
   0x1   :  { %v886_v0 = vld [vmem:[%s1426_s0 + $0x8] sm:$0xff]  ;;  %v891_v1 = vld [vmem:[%s1426_s0] sm:$0xff]  ;;  %v900_v2 = vld [vmem:[%s1426_s0 + $0x10] sm:$0xff]  ;;  %s853_s17 = smov 113   ;;  %s854_s20 = smov 127   ;;  %337 = vmatprep.mubr.f32.mxu0 %v858_v4  ;;  %408 = vmatprep.mubr.f32.mxu1 %v858_v4 }
   0x2   :  { %249 = vrot.lane.b32.xlu0 %v886_v0, %s851_s13  ;;  %247 = vrot.lane.b32.xlu1 %v891_v1, %s851_s13  ;;  %v917_v3 = vld [vmem:[%s1426_s0 + $0x18] sm:$0xff]  ;;  %s855_s0 = smov 1   ;;  %s856_s21 = smov 15   ;;  %v972_v6 = vld [vmem:[%s1427_s1 + $0x8] sm:$0xff]  ;;  %v22_v8 = vshrl.u32 %v21_v7, 7  ;;  %v985_v13 = vand.u32 127, %v21_v7 }
   0x3   :  { %s857_s22 = smov 16   ;;  %s859_s23 = smov 17   ;;  %839 = vset.pattern.permute.xlu0 %v860_v5  ;;  %v815_v11 = vld [vmem:[%s1427_s1 + $0x41] ss:$8 sm:$0xf] }
   0x4   :  { %v975_v9 = vsub.s32 1, %v22_v8  ;;  %v977_v10 = vsub.s32 0, %v22_v8  ;;  %v817_v12 = vld [vmem:[%s1427_s1 + $0x43] ss:$8 sm:$0xf]  ;;  %vm255_vm0 = vcmp.lt.s32.totalorder %v985_v13, 111 }
   0x5   :  { %v816_v21 = vld [vmem:[%s1427_s1 + $0x42] ss:$8 sm:$0xf]  ;;  %v1013_v26 = vsub.s32 3, %v22_v8  ;;  %vm238_vm1 = vcmp.lt.s32.totalorder %v985_v13, 112  ;;  %v1022_v30 = vsub.s32 2, %v22_v8 }
   0x6   :  { %251 = vrot.lane.b32.xlu0 %v900_v2, %s851_s13  ;;  %232 = vrot.lane.b32.xlu1 %v886_v0, %s852_s16  ;;  %v988_v14 = vrot.slane %v815_v11, %v975_v9  ;;  %v991_v15 = vrot.slane %v817_v12, %v975_v9  ;;  %v994_v16 = vrot.slane %v815_v11, %v977_v10  ;;  %vm221_vm2 = vcmp.lt.s32.totalorder %v985_v13, 113  ;;  %s863_s8 = smov 2  }
   0x7   :  { %v997_v17 = vrot.slane %v817_v12, %v977_v10  ;;  %v1018_v28 = vrot.slane %v816_v21, %v975_v9  ;;  %v1027_v34 = vrot.slane %v816_v21, %v977_v10  ;;  %v1030_v35 = vrot.slane %v815_v11, %v1013_v26 }
   0x8   :  { %v1002_v20 = vmul.f32 %v991_v15, %v988_v14  ;;  %v1041_v39 = vrot.slane %v817_v12, %v1013_v26  ;;  %v1046_v42 = vrot.slane %v815_v11, %v1022_v30  ;;  %v1049_v43 = vrot.slane %v817_v12, %v1022_v30 }
   0x9   :  { %v1009_v22 = vmul.f32 %v997_v17, %v994_v16  ;;  %v1038_v38 = vmul.f32 %v1018_v28, %v988_v14  ;;  %v1056_v48 = vmul.f32 %v1027_v34, %v994_v16  ;;  %vm204_vm3 = vcmp.lt.s32.totalorder %v985_v13, 127 }
   0xa   :  { %234 = vrot.lane.b32.xlu0 %v900_v2, %s852_s16  ;;  %230 = vrot.lane.b32.xlu1 %v891_v1, %s852_s16  ;;  %v1060_v49 = vmul.f32 %v1041_v39, %v1030_v35  ;;  %v1064_v50 = vmul.f32 %v1049_v43, %v1046_v42  ;;  %v1079_v62 = vrot.slane %v816_v21, %v1022_v30  ;;  %vm187_vm4 = vcmp.lt.s32.totalorder %v985_v13, 1 }
   0xb   :  { %v1083_v5 = vrot.slane %v816_v21, %v1013_v26  ;;  %vm170_vm5 = vcmp.lt.s32.totalorder %v985_v13, 15  ;;  %vm153_vm6 = vcmp.lt.s32.totalorder %v985_v13, 16  ;;  %vm136_vm7 = vcmp.lt.s32.totalorder %v985_v13, 17 }
   0xe   :  { %215 = vrot.lane.b32.xlu0 %v886_v0, %s853_s17  ;;  %217 = vrot.lane.b32.xlu1 %v900_v2, %s853_s17 }
  0x12   :  { %253 = vrot.lane.b32.xlu0 %v917_v3, %s851_s13  ;;  %213 = vrot.lane.b32.xlu1 %v891_v1, %s853_s17 }
  0x16   :  { %198 = vrot.lane.b32.xlu0 %v886_v0, %s854_s20  ;;  %200 = vrot.lane.b32.xlu1 %v900_v2, %s854_s20 }
  0x1a   :  { %236 = vrot.lane.b32.xlu0 %v917_v3, %s852_s16  ;;  %196 = vrot.lane.b32.xlu1 %v891_v1, %s854_s20 }
  0x1e   :  { %219 = vrot.lane.b32.xlu0 %v917_v3, %s853_s17  ;;  %179 = vrot.lane.b32.xlu1 %v891_v1, %s855_s0 }
  0x22   :  { %181 = vrot.lane.b32.xlu0 %v886_v0, %s855_s0  ;;  %202 = vrot.lane.b32.xlu1 %v917_v3, %s854_s20 }
  0x26   :  { %185 = vrot.lane.b32.xlu0 %v917_v3, %s855_s0  ;;  %162 = vrot.lane.b32.xlu1 %v891_v1, %s856_s21 }
  0x2a   :  { %164 = vrot.lane.b32.xlu0 %v886_v0, %s856_s21  ;;  %168 = vrot.lane.b32.xlu1 %v917_v3, %s856_s21 }
  0x2e   :  { %145 = vrot.lane.b32.xlu0 %v891_v1, %s857_s22  ;;  %147 = vrot.lane.b32.xlu1 %v886_v0, %s857_s22 }
  0x32   :  { %183 = vrot.lane.b32.xlu0 %v900_v2, %s855_s0  ;;  %151 = vrot.lane.b32.xlu1 %v917_v3, %s857_s22 }
  0x36   :  { %126 = vrot.lane.b32.xlu0 %v891_v1, %s859_s23  ;;  %128 = vrot.lane.b32.xlu1 %v886_v0, %s859_s23 }
  0x3a   :  { %166 = vrot.lane.b32.xlu0 %v900_v2, %s856_s21  ;;  %132 = vrot.lane.b32.xlu1 %v917_v3, %s859_s23 }
  0x3e   :  { %149 = vrot.lane.b32.xlu0 %v900_v2, %s857_s22  ;;  %130 = vrot.lane.b32.xlu1 %v900_v2, %s859_s23 }
  0x42   :  { %266 = vperm.xlu0 %839, %v972_v6  }
  0x74   :  { %v250_v18 = vpop.permute.xlu0 %249  ;;  %v248_v19 = vpop.permute.xlu1 %247 }
  0x75   :  { %v258_v23 = vsel %vm255_vm0, %v248_v19, %v250_v18 }
  0x76   :  { %v260_v31 = vmul.f32 %v258_v23, %v1009_v22 }
  0x78   :  { %v252_v24 = vpop.permute.xlu0 %251  ;;  %v233_v25 = vpop.permute.xlu1 %232 }
  0x79   :  { %v257_v27 = vsel %vm255_vm0, %v250_v18, %v252_v24 }
  0x7a   :  { %v261_v29 = vmul.f32 %v257_v27, %v1002_v20 }
  0x7c   :  { %287 = vmatprep.subr.mxu0 %v261_v29  ;;  %v235_v32 = vpop.permute.xlu0 %234  ;;  %v231_v33 = vpop.permute.xlu1 %230 }
  0x7d   :  { %v240_v36 = vsel %vm238_vm1, %v233_v25, %v235_v32  ;;  %v241_v37 = vsel %vm238_vm1, %v231_v33, %v233_v25  ;;  %288 = vmatpush1.msra.mxu0 %v260_v31  ;;  %v1100_v25 = vmul.f32 %v1083_v5, %v1030_v35 }
  0x7e   :  { %v244_v40 = vmul.f32 %v240_v36, %v988_v14  ;;  %v243_v41 = vmul.f32 %v241_v37, %v994_v16  ;;  %v814_v37 = vld [vmem:[%s1427_s1 + $0x40] ss:$8 sm:$0xf] }
  0x80   :  { %v216_v44 = vpop.permute.xlu0 %215  ;;  %289 = vmatprep.subr.mxu0 %v244_v40  ;;  %v218_v45 = vpop.permute.xlu1 %217 }
  0x81   :  { %v223_v46 = vsel %vm221_vm2, %v216_v44, %v218_v45  ;;  %290 = vmatpush1.msra.mxu0 %v243_v41 }
  0x82   :  { %v227_v47 = vmul.f32 %v223_v46, %v1038_v38  ;;  %v1121_v46 = vrot.slane %v814_v37, %v975_v9 }
  0x84   :  { %v254_v51 = vpop.permute.xlu0 %253  ;;  %291 = vmatprep.subr.mxu0 %v227_v47  ;;  %v214_v52 = vpop.permute.xlu1 %213 }
  0x85   :  { %v256_v53 = vsel %vm255_vm0, %v252_v24, %v254_v51  ;;  %v224_v54 = vsel %vm221_vm2, %v214_v52, %v216_v44  ;;  %v259_v55 = vsel %vm255_vm0, %v254_v51, %v248_v19  ;;  %v1093_v19 = vmul.f32 %v1079_v62, %v1046_v42 }
  0x86   :  { %v226_v56 = vmul.f32 %v224_v54, %v1056_v48  ;;  %v263_v57 = vmul.f32 %v259_v55, %v1060_v49  ;;  %v262_v58 = vmul.f32 %v256_v53, %v1064_v50 }
  0x88   :  { %v199_v59 = vpop.permute.xlu0 %198  ;;  %292 = vmatpush1.msra.mxu0 %v226_v56  ;;  %358 = vmatprep.subr.mxu1 %v263_v57  ;;  %v201_v60 = vpop.permute.xlu1 %200  ;;  %v1134_v56 = vmul.f32 %v991_v15, %v1121_v46 }
  0x89   :  { %v206_v61 = vsel %vm204_vm3, %v199_v59, %v201_v60  ;;  %359 = vmatpush1.msra.mxu1 %v262_v58 }
  0x8a   :  { %v210_v63 = vmul.f32 %v206_v61, %v991_v15 }
  0x8c   :  { %v237_v7 = vpop.permute.xlu0 %236  ;;  %293 = vmatprep.subr.mxu0 %v210_v63  ;;  %v197_v8 = vpop.permute.xlu1 %196 }
  0x8d   :  { %v239_v11 = vsel %vm238_vm1, %v235_v32, %v237_v7  ;;  %v242_v12 = vsel %vm238_vm1, %v237_v7, %v231_v33  ;;  %v207_v18 = vsel %vm204_vm3, %v197_v8, %v199_v59 }
  0x8e   :  { %v245_v23 = vmul.f32 %v239_v11, %v1046_v42  ;;  %v246_v21 = vmul.f32 %v242_v12, %v1030_v35  ;;  %v209_v24 = vmul.f32 %v207_v18, %v997_v17  ;;  %v1155_v18 = vmul.f32 %v1018_v28, %v1121_v46 }
  0x90   :  { %v220_v27 = vpop.permute.xlu0 %219  ;;  %294 = vmatpush1.msra.mxu0 %v209_v24  ;;  %360 = vmatprep.subr.mxu1 %v246_v21  ;;  %v180_v29 = vpop.permute.xlu1 %179 }
  0x91   :  { %v222_v31 = vsel %vm221_vm2, %v218_v45, %v220_v27  ;;  %v225_v32 = vsel %vm221_vm2, %v220_v27, %v214_v52  ;;  %361 = vmatpush1.msra.mxu1 %v245_v23  ;;  %295 = vmatprep.subr.mxu0 %v886_v0  ;;  %v1127_v52 = vrot.slane %v814_v37, %v977_v10 }
  0x92   :  { %v228_v33 = vmul.f32 %v222_v31, %v1093_v19  ;;  %v229_v36 = vmul.f32 %v225_v32, %v1100_v25  ;;  %296 = vmatpush1.msra.mxu0 %v891_v1  ;;  %v1165_v27 = vrot.slane %v814_v37, %v1022_v30 }
  0x93   :  { %v1139_v10 = vmul.f32 %v997_v17, %v1127_v52 }
  0x94   :  { %v182_v40 = vpop.permute.xlu0 %181  ;;  %362 = vmatprep.subr.mxu1 %v229_v36  ;;  %v203_v41 = vpop.permute.xlu1 %202 }
  0x95   :  { %v190_v44 = vsel %vm187_vm4, %v180_v29, %v182_v40  ;;  %v205_v0 = vsel %vm204_vm3, %v201_v60, %v203_v41  ;;  %v208_v45 = vsel %vm204_vm3, %v203_v41, %v197_v8  ;;  %363 = vmatpush1.msra.mxu1 %v228_v33  ;;  %v1171_v33 = vrot.slane %v814_v37, %v1013_v26 }
  0x96   :  { %v193_v1 = vmul.f32 %v190_v44, %v1018_v28  ;;  %v211_v47 = vmul.f32 %v205_v0, %v1049_v43  ;;  %v212_v51 = vmul.f32 %v208_v45, %v1041_v39  ;;  %v1178_v44 = vmul.f32 %v1049_v43, %v1165_v27 }
  0x97   :  { %v1182_v0 = vmul.f32 %v1041_v39, %v1171_v33  ;;  %v1186_v26 = vmul.f32 %v1027_v34, %v1127_v52 }
  0x98   :  { %v186_v53 = vpop.permute.xlu0 %185  ;;  %297 = vmatprep.subr.mxu0 %v193_v1  ;;  %364 = vmatprep.subr.mxu1 %v212_v51  ;;  %v163_v54 = vpop.permute.xlu1 %162 }
  0x99   :  { %v191_v55 = vsel %vm187_vm4, %v186_v53, %v180_v29  ;;  %365 = vmatpush1.msra.mxu1 %v211_v47 }
  0x9a   :  { %v192_v9 = vmul.f32 %v191_v55, %v1027_v34  ;;  %366 = vmatprep.subr.mxu1 %v917_v3 }
  0x9b   :  { %367 = vmatpush1.msra.mxu1 %v900_v2 }
  0x9c   :  { %v165_v57 = vpop.permute.xlu0 %164  ;;  %298 = vmatpush1.msra.mxu0 %v192_v9  ;;  %v169_v58 = vpop.permute.xlu1 %168  ;;  %v15_v9 = vld [vmem:[%s1427_s1] sm:$0xff] }
  0x9d   :  { %v173_v59 = vsel %vm170_vm5, %v163_v54, %v165_v57  ;;  %v174_v60 = vsel %vm170_vm5, %v169_v58, %v163_v54 }
  0x9e   :  { %v176_v61 = vmul.f32 %v173_v59, %v1134_v56  ;;  %v175_v63 = vmul.f32 %v174_v60, %v1139_v10 }
  0xa0   :  { %v146_v7 = vpop.permute.xlu0 %145  ;;  %299 = vmatprep.subr.mxu0 %v176_v61  ;;  %v148_v3 = vpop.permute.xlu1 %147 }
  0xa1   :  { %v156_v2 = vsel %vm153_vm6, %v146_v7, %v148_v3  ;;  %300 = vmatpush1.msra.mxu0 %v175_v63  ;;  %v1210_v63 = vmul.f32 %v1079_v62, %v1165_v27 }
  0xa2   :  { %v159_v8 = vmul.f32 %v156_v2, %v1121_v46 }
  0xa4   :  { %v184_v11 = vpop.permute.xlu0 %183  ;;  %301 = vmatprep.subr.mxu0 %v159_v8  ;;  %v152_v12 = vpop.permute.xlu1 %151 }
  0xa5   :  { %v188_v23 = vsel %vm187_vm4, %v184_v11, %v186_v53  ;;  %v189_v21 = vsel %vm187_vm4, %v182_v40, %v184_v11  ;;  %v157_v24 = vsel %vm153_vm6, %v152_v12, %v146_v7 }
  0xa6   :  { %v194_v29 = vmul.f32 %v189_v21, %v1079_v62  ;;  %v195_v31 = vmul.f32 %v188_v23, %v1083_v5  ;;  %v158_v32 = vmul.f32 %v157_v24, %v1127_v52 }
  0xa8   :  { %v127_v36 = vpop.permute.xlu0 %126  ;;  %302 = vmatpush1.msra.mxu0 %v158_v32  ;;  %368 = vmatprep.subr.mxu1 %v195_v31  ;;  %v129_v41 = vpop.permute.xlu1 %128 }
  0xa9   :  { %v139_v40 = vsel %vm136_vm7, %v127_v36, %v129_v41  ;;  %369 = vmatpush1.msra.mxu1 %v194_v29 }
  0xaa   :  { %v142_v30 = vmul.f32 %v139_v40, %v1155_v18 }
  0xac   :  { %v167_v37 = vpop.permute.xlu0 %166  ;;  %303 = vmatprep.subr.mxu0 %v142_v30  ;;  %v133_v45 = vpop.permute.xlu1 %132 }
  0xad   :  { %v171_v1 = vsel %vm170_vm5, %v167_v37, %v169_v58  ;;  %v172_v47 = vsel %vm170_vm5, %v165_v57, %v167_v37  ;;  %v140_v51 = vsel %vm136_vm7, %v133_v45, %v127_v36  ;;  %v1202_v57 = vmul.f32 %v1083_v5, %v1171_v33 }
  0xae   :  { %v177_v53 = vmul.f32 %v172_v47, %v1178_v44  ;;  %v178_v54 = vmul.f32 %v171_v1, %v1182_v0  ;;  %v141_v55 = vmul.f32 %v140_v51, %v1186_v26 }
  0xb0   :  { %v150_v59 = vpop.permute.xlu0 %149  ;;  %304 = vmatpush1.msra.mxu0 %v141_v55  ;;  %370 = vmatprep.subr.mxu1 %v178_v54  ;;  %v131_v58 = vpop.permute.xlu1 %130 }
  0xb1   :  { %v154_v60 = vsel %vm153_vm6, %v150_v59, %v152_v12  ;;  %v155_v61 = vsel %vm153_vm6, %v148_v3, %v150_v59  ;;  %v137_v7 = vsel %vm136_vm7, %v131_v58, %v133_v45  ;;  %371 = vmatpush1.msra.mxu1 %v177_v53  ;;  %v138_v11 = vsel %vm136_vm7, %v129_v41, %v131_v58 }
  0xb2   :  { %v160_v2 = vmul.f32 %v155_v61, %v1165_v27  ;;  %v161_v8 = vmul.f32 %v154_v60, %v1171_v33  ;;  %818 = vmatmul.mubr.msk.f32.vlgmr.msra.gmra.mxu0 %vm269_vm8, %v15_v9  ;;  %v144_v3 = vmul.f32 %v137_v7, %v1202_v57  ;;  %v143_v12 = vmul.f32 %v138_v11, %v1210_v63 }
  0xb3   :  { %673 = vmatprep.mubr.f32.mxu0 %v858_v4 }
  0xb4   :  { %372 = vmatprep.subr.mxu1 %v161_v8 }
  0xb5   :  { %373 = vmatpush1.msra.mxu1 %v160_v2  ;;  %v861_v2 = vmov 1  }
  0xb6   :  { %374 = vmatprep.subr.mxu1 %v144_v3  ;;  %840 = vset.pattern.permute.xlu1 %v861_v2 }
  0xb7   :  { %375 = vmatpush1.msra.mxu1 %v143_v12  ;;  %v862_v12 = vmov 4  }
  0xb8   :  { %819 = vmatmul.mubr.msk.f32.vlgmr.msra.gmra.mxu1 %vm269_vm8, %v15_v9  ;;  %842 = vset.pattern.permute.xlu0 %v862_v12 }
  0xb9   :  { %744 = vmatprep.mubr.f32.mxu1 %v858_v4 }
  0xbd   :  { %v267_v21 = vpop.permute.xlu0 %266 }
 0x172   :  { %v339_v23 = vpop.f32.mrf.mxu0 }
 0x173   :  { %v340_v29 = vadd.f32 %v339_v23, %v267_v21 }
 0x174   :  { %v341_v24 = vpop.f32.mrf.mxu0 }
 0x175   :  { %v342_v31 = vadd.f32 %v341_v24, %v267_v21 }
 0x177   :  { %v415_v36 = vadd.f32 %v342_v31, %v340_v29 }
 0x178   :  { %v410_v32 = vpop.f32.mrf.mxu1 }
 0x179   :  { %v411_v41 = vadd.f32 %v410_v32, %v267_v21 }
 0x17a   :  { %v412_v40 = vpop.f32.mrf.mxu1 }
 0x17b   :  { %v413_v30 = vadd.f32 %v412_v40, %v267_v21  ;;  %v416_v37 = vadd.f32 %v415_v36, %v411_v41  ;;  %v864_v40 = vmov 3  }
 0x17d   :  { %v417_v45 = vadd.f32 %v416_v37, %v413_v30 }
 0x17f   :  { %418 = vadd.xlane.f32.xlu1 %v417_v45 }
 0x190   :  { %438 = vrot.lane.b32.xlu1 %v972_v6, %s854_s20 }
 0x208   :  { %v419_v1 = vpop.xlane.xlu1 %418 }
 0x209   :  { %v420_v47 = vmul.f32 0.001953125, %v419_v1 }
 0x20b   :  { %v421_v51 = vsub.f32 %v340_v29, %v420_v47  ;;  %v422_v4 = vsub.f32 %v342_v31, %v420_v47  ;;  %v423_v53 = vsub.f32 %v411_v41, %v420_v47  ;;  %v424_v54 = vsub.f32 %v413_v30, %v420_v47 }
 0x20c   :  { %v439_v21 = vpop.permute.xlu1 %438 }
 0x20d   :  { %v425_v55 = vmul.f32 %v421_v51, %v421_v51  ;;  %v426_v9 = vmul.f32 %v422_v4, %v422_v4  ;;  %v427_v59 = vmul.f32 %v423_v53, %v423_v53  ;;  %v428_v60 = vmul.f32 %v424_v54, %v424_v54 }
 0x20f   :  { %v429_v58 = vadd.f32 %v426_v9, %v425_v55 }
 0x211   :  { %v430_v61 = vadd.f32 %v429_v58, %v427_v59 }
 0x213   :  { %v431_v7 = vadd.f32 %v430_v61, %v428_v60 }
 0x215   :  { %432 = vadd.xlane.f32.xlu0 %v431_v7 }
 0x29e   :  { %v433_v8 = vpop.xlane.xlu0 %432 }
 0x29f   :  { %v434_v11 = vmul.f32 0.001953125, %v433_v8 }
 0x2a1   :  { %v435_v3 = vadd.f32 1e-05, %v434_v11 }
 0x2a3   :  { %847 = vrsqrt.f32 %v435_v3 }
 0x2b0   :  { %v848_v23 = vpop.eup %847 }
 0x2b1   :  { %v437_v24 = vmul.f32 %v848_v23, %v972_v6 }
 0x2b3   :  { %v441_v32 = vadd.f32 %v439_v21, %v437_v24  ;;  %v451_v36 = vmul.f32 %v437_v24, %v420_v47 }
 0x2b5   :  { %453 = vrot.lane.b32.xlu0 %v451_v36, %s863_s8  ;;  %444 = vperm.xlu1 %840, %v441_v32  }
 0x2b9   :  { %841 = vset.pattern.permute.xlu1 %v864_v40  ;;  %467 = vperm.xlu0 %842, %v972_v6  }
 0x327   :  { %v454_v37 = vpop.permute.xlu0 %453 }
 0x328   :  { %v456_v45 = vsub.f32 %v972_v6, %v454_v37 }
 0x32a   :  { %459 = vperm.xlu1 %841, %v456_v45  }
 0x330   :  { %v445_v1 = vpop.permute.xlu1 %444 }
 0x331   :  { %v447_v51 = vmul.f32 %v445_v1, %v340_v29  ;;  %v448_v4 = vmul.f32 %v445_v1, %v342_v31  ;;  %v449_v55 = vmul.f32 %v445_v1, %v411_v41  ;;  %v450_v29 = vmul.f32 %v445_v1, %v413_v30 }
 0x332   :  { %v865_v30 = vmov 5  }
 0x333   :  { %843 = vset.pattern.permute.xlu0 %v865_v30 }
 0x334   :  { %v468_v54 = vpop.permute.xlu0 %467 }
 0x3a5   :  { %v460_v53 = vpop.permute.xlu1 %459 }
 0x3a6   :  { %v462_v9 = vadd.f32 %v460_v53, %v447_v51  ;;  %v463_v59 = vadd.f32 %v460_v53, %v448_v4  ;;  %v464_v47 = vadd.f32 %v460_v53, %v449_v55  ;;  %v465_v31 = vadd.f32 %v460_v53, %v450_v29 }
 0x3a8   :  { %v1229_v58 = vmax.f32 %v462_v9, %v468_v54  ;;  %v1231_v60 = vmax.f32 %v463_v59, %v468_v54  ;;  %v1237_v61 = vmax.f32 %v464_v47, %v468_v54  ;;  %v1247_v41 = vmax.f32 %v465_v31, %v468_v54 }
 0x3aa   :  { %588 = vrot.lane.b32.xlu1 %v1231_v60, %s851_s13  ;;  %586 = vrot.lane.b32.xlu0 %v1229_v58, %s851_s13 }
 0x3ae   :  { %590 = vrot.lane.b32.xlu1 %v1237_v61, %s851_s13  ;;  %574 = vrot.lane.b32.xlu0 %v1237_v61, %s852_s16 }
 0x3b2   :  { %572 = vrot.lane.b32.xlu1 %v1231_v60, %s852_s16  ;;  %556 = vrot.lane.b32.xlu0 %v1231_v60, %s853_s17 }
 0x3b6   :  { %570 = vrot.lane.b32.xlu1 %v1229_v58, %s852_s16  ;;  %592 = vrot.lane.b32.xlu0 %v1247_v41, %s851_s13 }
 0x3ba   :  { %558 = vrot.lane.b32.xlu1 %v1237_v61, %s853_s17  ;;  %540 = vrot.lane.b32.xlu0 %v1231_v60, %s854_s20 }
 0x3be   :  { %554 = vrot.lane.b32.xlu1 %v1229_v58, %s853_s17  ;;  %576 = vrot.lane.b32.xlu0 %v1247_v41, %s852_s16 }
 0x3c2   :  { %542 = vrot.lane.b32.xlu1 %v1237_v61, %s854_s20  ;;  %560 = vrot.lane.b32.xlu0 %v1247_v41, %s853_s17 }
 0x3c6   :  { %538 = vrot.lane.b32.xlu1 %v1229_v58, %s854_s20  ;;  %524 = vrot.lane.b32.xlu0 %v1231_v60, %s855_s0 }
 0x3ca   :  { %522 = vrot.lane.b32.xlu1 %v1229_v58, %s855_s0  ;;  %528 = vrot.lane.b32.xlu0 %v1247_v41, %s855_s0 }
 0x3ce   :  { %544 = vrot.lane.b32.xlu1 %v1247_v41, %s854_s20  ;;  %508 = vrot.lane.b32.xlu0 %v1231_v60, %s856_s21 }
 0x3d2   :  { %506 = vrot.lane.b32.xlu1 %v1229_v58, %s856_s21  ;;  %490 = vrot.lane.b32.xlu0 %v1229_v58, %s857_s22 }
 0x3d6   :  { %512 = vrot.lane.b32.xlu1 %v1247_v41, %s856_s21  ;;  %526 = vrot.lane.b32.xlu0 %v1237_v61, %s855_s0 }
 0x3da   :  { %492 = vrot.lane.b32.xlu1 %v1231_v60, %s857_s22  ;;  %474 = vrot.lane.b32.xlu0 %v1229_v58, %s859_s23 }
 0x3de   :  { %496 = vrot.lane.b32.xlu1 %v1247_v41, %s857_s22  ;;  %510 = vrot.lane.b32.xlu0 %v1237_v61, %s856_s21 }
 0x3e2   :  { %476 = vrot.lane.b32.xlu1 %v1231_v60, %s859_s23  ;;  %494 = vrot.lane.b32.xlu0 %v1237_v61, %s857_s22 }
 0x3e6   :  { %480 = vrot.lane.b32.xlu1 %v1247_v41, %s859_s23  ;;  %603 = vperm.xlu0 %843, %v972_v6  }
 0x3ea   :  { %478 = vrot.lane.b32.xlu1 %v1237_v61, %s859_s23 }
 0x41c   :  { %v589_v7 = vpop.permute.xlu1 %588  ;;  %v587_v2 = vpop.permute.xlu0 %586 }
 0x41d   :  { %v596_v8 = vsel %vm255_vm0, %v587_v2, %v589_v7 }
 0x41e   :  { %v598_v21 = vmul.f32 %v596_v8, %v1009_v22 }
 0x420   :  { %v591_v11 = vpop.permute.xlu1 %590  ;;  %v575_v3 = vpop.permute.xlu0 %574 }
 0x421   :  { %v595_v12 = vsel %vm255_vm0, %v589_v7, %v591_v11 }
 0x422   :  { %v599_v23 = vmul.f32 %v595_v12, %v1002_v20 }
 0x424   :  { %623 = vmatprep.subr.mxu0 %v599_v23  ;;  %v573_v24 = vpop.permute.xlu1 %572  ;;  %v557_v32 = vpop.permute.xlu0 %556 }
 0x425   :  { %v579_v36 = vsel %vm238_vm1, %v573_v24, %v575_v3  ;;  %624 = vmatpush1.msra.mxu0 %v598_v21 }
 0x426   :  { %v583_v40 = vmul.f32 %v579_v36, %v988_v14 }
 0x428   :  { %v571_v37 = vpop.permute.xlu1 %570  ;;  %625 = vmatprep.subr.mxu0 %v583_v40  ;;  %v593_v45 = vpop.permute.xlu0 %592 }
 0x429   :  { %v580_v1 = vsel %vm238_vm1, %v571_v37, %v573_v24  ;;  %v594_v20 = vsel %vm255_vm0, %v591_v11, %v593_v45  ;;  %v597_v22 = vsel %vm255_vm0, %v593_v45, %v587_v2 }
 0x42a   :  { %v582_v51 = vmul.f32 %v580_v1, %v994_v16  ;;  %v600_v4 = vmul.f32 %v594_v20, %v1064_v50  ;;  %v601_v53 = vmul.f32 %v597_v22, %v1060_v49 }
 0x42c   :  { %v559_v54 = vpop.permute.xlu1 %558  ;;  %626 = vmatpush1.msra.mxu0 %v582_v51  ;;  %694 = vmatprep.subr.mxu1 %v601_v53  ;;  %v541_v14 = vpop.permute.xlu0 %540 }
 0x42d   :  { %v563_v55 = vsel %vm221_vm2, %v557_v32, %v559_v54  ;;  %695 = vmatpush1.msra.mxu1 %v600_v4 }
 0x42e   :  { %v567_v9 = vmul.f32 %v563_v55, %v1038_v38 }
 0x430   :  { %v555_v59 = vpop.permute.xlu1 %554  ;;  %627 = vmatprep.subr.mxu0 %v567_v9  ;;  %v577_v47 = vpop.permute.xlu0 %576 }
 0x431   :  { %v564_v16 = vsel %vm221_vm2, %v555_v59, %v557_v32  ;;  %v578_v50 = vsel %vm238_vm1, %v575_v3, %v577_v47  ;;  %v581_v49 = vsel %vm238_vm1, %v577_v47, %v571_v37 }
 0x432   :  { %v566_v29 = vmul.f32 %v564_v16, %v1056_v48  ;;  %v584_v31 = vmul.f32 %v578_v50, %v1046_v42  ;;  %v585_v30 = vmul.f32 %v581_v49, %v1030_v35 }
 0x434   :  { %v543_v7 = vpop.permute.xlu1 %542  ;;  %628 = vmatpush1.msra.mxu0 %v566_v29  ;;  %696 = vmatprep.subr.mxu1 %v585_v30  ;;  %v561_v38 = vpop.permute.xlu0 %560 }
 0x435   :  { %v547_v2 = vsel %vm204_vm3, %v541_v14, %v543_v7  ;;  %v562_v8 = vsel %vm221_vm2, %v559_v54, %v561_v38  ;;  %v565_v11 = vsel %vm221_vm2, %v561_v38, %v555_v59  ;;  %697 = vmatpush1.msra.mxu1 %v584_v31 }
 0x436   :  { %v551_v48 = vmul.f32 %v547_v2, %v991_v15  ;;  %v568_v42 = vmul.f32 %v562_v8, %v1093_v19  ;;  %v569_v35 = vmul.f32 %v565_v11, %v1100_v25 }
 0x438   :  { %v539_v3 = vpop.permute.xlu1 %538  ;;  %629 = vmatprep.subr.mxu0 %v551_v48  ;;  %698 = vmatprep.subr.mxu1 %v569_v35  ;;  %v525_v12 = vpop.permute.xlu0 %524  ;;  %v16_v35 = vld [vmem:[%s1427_s1 + $0x20] sm:$0xff] }
 0x439   :  { %v548_v23 = vsel %vm204_vm3, %v539_v3, %v541_v14  ;;  %699 = vmatpush1.msra.mxu1 %v568_v42 }
 0x43a   :  { %v550_v21 = vmul.f32 %v548_v23, %v997_v17 }
 0x43c   :  { %v523_v24 = vpop.permute.xlu1 %522  ;;  %630 = vmatpush1.msra.mxu0 %v550_v21  ;;  %v529_v32 = vpop.permute.xlu0 %528 }
 0x43d   :  { %v532_v15 = vsel %vm187_vm4, %v523_v24, %v525_v12  ;;  %v533_v19 = vsel %vm187_vm4, %v529_v32, %v523_v24  ;;  %631 = vmatprep.subr.mxu0 %v1231_v60 }
 0x43e   :  { %v535_v25 = vmul.f32 %v532_v15, %v1018_v28  ;;  %v534_v36 = vmul.f32 %v533_v19, %v1027_v34  ;;  %632 = vmatpush1.msra.mxu0 %v1229_v58 }
 0x440   :  { %v545_v40 = vpop.permute.xlu1 %544  ;;  %633 = vmatprep.subr.mxu0 %v535_v25  ;;  %v509_v17 = vpop.permute.xlu0 %508 }
 0x441   :  { %v546_v37 = vsel %vm204_vm3, %v543_v7, %v545_v40  ;;  %v549_v45 = vsel %vm204_vm3, %v545_v40, %v539_v3  ;;  %634 = vmatpush1.msra.mxu0 %v534_v36 }
 0x442   :  { %v552_v1 = vmul.f32 %v546_v37, %v1049_v43  ;;  %v553_v20 = vmul.f32 %v549_v45, %v1041_v39 }
 0x444   :  { %v507_v22 = vpop.permute.xlu1 %506  ;;  %700 = vmatprep.subr.mxu1 %v553_v20  ;;  %v491_v28 = vpop.permute.xlu0 %490 }
 0x445   :  { %v516_v34 = vsel %vm170_vm5, %v507_v22, %v509_v17  ;;  %701 = vmatpush1.msra.mxu1 %v552_v1 }
 0x446   :  { %v519_v51 = vmul.f32 %v516_v34, %v1134_v56  ;;  %702 = vmatprep.subr.mxu1 %v1247_v41 }
 0x447   :  { %703 = vmatpush1.msra.mxu1 %v1237_v61 }
 0x448   :  { %v513_v4 = vpop.permute.xlu1 %512  ;;  %635 = vmatprep.subr.mxu0 %v519_v51  ;;  %v527_v53 = vpop.permute.xlu0 %526 }
 0x449   :  { %v517_v43 = vsel %vm170_vm5, %v513_v4, %v507_v22  ;;  %v530_v39 = vsel %vm187_vm4, %v527_v53, %v529_v32  ;;  %v531_v54 = vsel %vm187_vm4, %v525_v12, %v527_v53 }
 0x44a   :  { %v518_v14 = vmul.f32 %v517_v43, %v1139_v10  ;;  %v536_v56 = vmul.f32 %v531_v54, %v1079_v62  ;;  %v537_v55 = vmul.f32 %v530_v39, %v1083_v5 }
 0x44c   :  { %v493_v9 = vpop.permute.xlu1 %492  ;;  %636 = vmatpush1.msra.mxu0 %v518_v14  ;;  %704 = vmatprep.subr.mxu1 %v537_v55  ;;  %v475_v59 = vpop.permute.xlu0 %474  ;;  %v867_v55 = vmov 7  }
 0x44d   :  { %v500_v47 = vsel %vm153_vm6, %v491_v28, %v493_v9  ;;  %705 = vmatpush1.msra.mxu1 %v536_v56  ;;  %845 = vset.pattern.permute.xlu1 %v867_v55 }
 0x44e   :  { %v503_v16 = vmul.f32 %v500_v47, %v1121_v46 }
 0x450   :  { %v497_v50 = vpop.permute.xlu1 %496  ;;  %637 = vmatprep.subr.mxu0 %v503_v16  ;;  %v511_v49 = vpop.permute.xlu0 %510 }
 0x451   :  { %v501_v10 = vsel %vm153_vm6, %v497_v50, %v491_v28  ;;  %v514_v62 = vsel %vm170_vm5, %v511_v49, %v513_v4  ;;  %v515_v5 = vsel %vm170_vm5, %v509_v17, %v511_v49 }
 0x452   :  { %v502_v29 = vmul.f32 %v501_v10, %v1127_v52  ;;  %v520_v31 = vmul.f32 %v515_v5, %v1178_v44  ;;  %v521_v30 = vmul.f32 %v514_v62, %v1182_v0 }
 0x454   :  { %v477_v7 = vpop.permute.xlu1 %476  ;;  %638 = vmatpush1.msra.mxu0 %v502_v29  ;;  %706 = vmatprep.subr.mxu1 %v521_v30  ;;  %v495_v46 = vpop.permute.xlu0 %494 }
 0x455   :  { %v484_v38 = vsel %vm136_vm7, %v475_v59, %v477_v7  ;;  %v498_v2 = vsel %vm153_vm6, %v495_v46, %v497_v50  ;;  %v499_v8 = vsel %vm153_vm6, %v493_v9, %v495_v46  ;;  %707 = vmatpush1.msra.mxu1 %v520_v31 }
 0x456   :  { %v487_v52 = vmul.f32 %v484_v38, %v1155_v18  ;;  %v504_v44 = vmul.f32 %v499_v8, %v1165_v27  ;;  %v505_v0 = vmul.f32 %v498_v2, %v1171_v33 }
 0x458   :  { %v481_v11 = vpop.permute.xlu1 %480  ;;  %639 = vmatprep.subr.mxu0 %v487_v52  ;;  %708 = vmatprep.subr.mxu1 %v505_v0 }
 0x459   :  { %v485_v48 = vsel %vm136_vm7, %v481_v11, %v475_v59  ;;  %709 = vmatpush1.msra.mxu1 %v504_v44 }
 0x45a   :  { %v486_v42 = vmul.f32 %v485_v48, %v1186_v26 }
 0x45c   :  { %v479_v3 = vpop.permute.xlu1 %478  ;;  %640 = vmatpush1.msra.mxu0 %v486_v42 }
 0x45d   :  { %v482_v18 = vsel %vm136_vm7, %v479_v3, %v481_v11  ;;  %v483_v27 = vsel %vm136_vm7, %v477_v7, %v479_v3  ;;  %820 = vmatmul.mubr.msk.f32.vlgmr.msra.gmra.mxu0 %vm269_vm8, %v16_v35 }
 0x45e   :  { %v488_v33 = vmul.f32 %v483_v27, %v1210_v63  ;;  %v489_v12 = vmul.f32 %v482_v18, %v1202_v57 }
 0x460   :  { %710 = vmatprep.subr.mxu1 %v489_v12 }
 0x461   :  { %711 = vmatpush1.msra.mxu1 %v488_v33  ;;  %v604_v26 = vpop.permute.xlu0 %603 }
 0x462   :  { %821 = vmatmul.mubr.msk.f32.vlgmr.msra.gmra.mxu1 %vm269_vm8, %v16_v35 }
 0x51d   :  { %v675_v23 = vpop.f32.mrf.mxu0 }
 0x51e   :  { %v676_v21 = vadd.f32 %v675_v23, %v604_v26 }
 0x51f   :  { %v677_v24 = vpop.f32.mrf.mxu0 }
 0x520   :  { %v678_v32 = vadd.f32 %v677_v24, %v604_v26  ;;  %v751_v15 = vadd.f32 %v676_v21, %v1229_v58 }
 0x522   :  { %v752_v13 = vadd.f32 %v678_v32, %v1231_v60  ;;  %v746_v19 = vpop.f32.mrf.mxu1 }
 0x523   :  { %v747_v25 = vadd.f32 %v746_v19, %v604_v26 }
 0x524   :  { %v748_v36 = vpop.f32.mrf.mxu1  ;;  %v755_v40 = vadd.f32 %v752_v13, %v751_v15 }
 0x525   :  { %v753_v63 = vadd.f32 %v747_v25, %v1237_v61  ;;  %v749_v57 = vadd.f32 %v748_v36, %v604_v26  ;;  %v866_v61 = vmov 6  }
 0x526   :  { %844 = vset.pattern.permute.xlu0 %v866_v61 }
 0x527   :  { %v754_v17 = vadd.f32 %v749_v57, %v1247_v41  ;;  %v756_v37 = vadd.f32 %v755_v40, %v753_v63 }
 0x529   :  { %v757_v45 = vadd.f32 %v756_v37, %v754_v17 }
 0x52b   :  { %758 = vadd.xlane.f32.xlu1 %v757_v45 }
 0x5b4   :  { %v759_v1 = vpop.xlane.xlu1 %758 }
 0x5b5   :  { %v760_v20 = vmul.f32 0.001953125, %v759_v1 }
 0x5b7   :  { %v761_v22 = vsub.f32 %v751_v15, %v760_v20  ;;  %v762_v28 = vsub.f32 %v752_v13, %v760_v20  ;;  %v763_v34 = vsub.f32 %v753_v63, %v760_v20  ;;  %v764_v58 = vsub.f32 %v754_v17, %v760_v20 }
 0x5b9   :  { %v765_v51 = vmul.f32 %v761_v22, %v761_v22  ;;  %v766_v60 = vmul.f32 %v762_v28, %v762_v28  ;;  %v767_v4 = vmul.f32 %v763_v34, %v763_v34  ;;  %v768_v43 = vmul.f32 %v764_v58, %v764_v58 }
 0x5bb   :  { %v769_v53 = vadd.f32 %v766_v60, %v765_v51 }
 0x5bd   :  { %v770_v39 = vadd.f32 %v769_v53, %v767_v4 }
 0x5bf   :  { %v771_v54 = vadd.f32 %v770_v39, %v768_v43 }
 0x5c1   :  { %772 = vadd.xlane.f32.xlu0 %v771_v54 }
 0x64a   :  { %v773_v41 = vpop.xlane.xlu0 %772 }
 0x64b   :  { %v774_v14 = vmul.f32 0.001953125, %v773_v41 }
 0x64d   :  { %v775_v56 = vadd.f32 1e-05, %v774_v14 }
 0x64f   :  { %849 = vrsqrt.f32 %v775_v56 }
 0x65c   :  { %v850_v9 = vpop.eup %849 }
 0x65d   :  { %v777_v59 = vmul.f32 %v850_v9, %v972_v6 }
 0x65f   :  { %780 = vperm.xlu0 %844, %v777_v59   ;;  %v787_v47 = vmul.f32 %v777_v59, %v760_v20 }
 0x661   :  { %789 = vrot.lane.b32.xlu1 %v787_v47, %s855_s0 }
 0x663   :  { %846 = vset.pattern.permute.xlu0 %v867_v55 }
 0x6d3   :  { %v790_v16 = vpop.permute.xlu1 %789 }
 0x6d4   :  { %v792_v50 = vsub.f32 %v972_v6, %v790_v16 }
 0x6d6   :  { %795 = vperm.xlu1 %845, %v792_v50  }
 0x6da   :  { %v781_v49 = vpop.permute.xlu0 %780 }
 0x6db   :  { %v783_v10 = vmul.f32 %v781_v49, %v751_v15  ;;  %v784_v62 = vmul.f32 %v781_v49, %v752_v13  ;;  %v785_v5 = vmul.f32 %v781_v49, %v753_v63  ;;  %v786_v29 = vmul.f32 %v781_v49, %v754_v17 }
 0x751   :  { %v796_v31 = vpop.permute.xlu1 %795 }
 0x752   :  { %v798_v30 = vadd.f32 %v796_v31, %v783_v10  ;;  %v799_v7 = vadd.f32 %v796_v31, %v784_v62  ;;  %v800_v46 = vadd.f32 %v796_v31, %v785_v5  ;;  %v801_v38 = vadd.f32 %v796_v31, %v786_v29 }
 0x754   :  { %v802_v2 = vmax.f32 %v798_v30, 0.0  ;;  %v803_v8 = vmax.f32 %v799_v7, 0.0  ;;  %v804_v52 = vmax.f32 %v800_v46, 0.0  ;;  %v805_v44 = vmax.f32 %v801_v38, 0.0 }
 0x756   :  { %806 = vst [vmem:[%s1428_s2] sm:$0xff] %v802_v2  ;;  %807 = vst [vmem:[%s1428_s2 + $0x8] sm:$0xff] %v803_v8 }
 0x757   :  { %808 = vst [vmem:[%s1428_s2 + $0x10] sm:$0xff] %v804_v52  ;;  %809 = vst [vmem:[%s1428_s2 + $0x18] sm:$0xff] %v805_v44 }

</bundles_post_ra>
